<compile_context>
chip_gen: v5e
topology: v5e:2x2
jax: 0.10.0
libtpu: 0.0.40
codegen_flags: <defaults>
</compile_context>

<pallas_src>
import functools

import jax
import jax.numpy as jnp
from jax import lax
from jax.experimental import pallas as pl
from jax.experimental.pallas import tpu as pltpu


# ----------------------------- fused loss kernel ----------------------------

def _fused_loss_kernel(mo_ref, tg_ref, w_ref, z_ref, *out_refs,
                       loss_type, inv_range, s_offset, n_samples,
                       n_chunks, rc_rows, emit_img, sample_unroll):
    """One grid step = (batch b, ray-block g) covering n_chunks (rc_rows,128)
    ray chunks.

    Emits lane-dense per-block partial sums (final tiny reduce happens in XLA):
      rgb_part[b, g]  = sum_{c, rays in block} err(model_out, target)
      dist_part[b, g] = sum_{rays} [ sum_{i,j} w_i w_j |s_i - s_j|
                                     + (1/3) sum_i w_i^2 (s_{i+1} - s_i) ]
    plus (optionally) the unnormalized model_out block.

    NOTE: the O(N_samples) running-prefix form of the bi-term assumes z_vals
    are sorted ascending along the sample axis (stratified NeRF samples are).
    """
    if emit_img:
        img_ref, rgb_ref, dist_ref = out_refs
    else:
        rgb_ref, dist_ref = out_refs

    n_colors = mo_ref.shape[1]
    zero = jnp.zeros((rc_rows, 128), jnp.float32)

    # Unnormalized model_out passthrough (extras[0]); one dense elementwise map.
    if emit_img:
        img_ref[...] = ((mo_ref[...].astype(jnp.float32) + 1.0) * 0.5
                        ).astype(img_ref.dtype)

    def chunk_body(rc, carry):
        acc_rgb, acc_dist = carry

        # ---- rgb L1/L2 partial: pure-VALU fold over colors (no XLU reduce) ----
        err = zero
        for cc in range(n_colors):          # C is small and static
            d = (mo_ref[0, cc, rc].astype(jnp.float32)
                 - tg_ref[0, cc, rc].astype(jnp.float32))
            err = err + (jnp.abs(d) if loss_type == "l1" else d * d)
        acc_rgb = acc_rgb + err

        # ---- distortion: O(N_samples) running prefix over sorted s ----
        def sample_body(i, sc):
            cw, cws, bi, uni, pw2, ps = sc
            wi = w_ref[0, i, rc].astype(jnp.float32)           # (rc_rows, 128)
            si = z_ref[0, i, rc].astype(jnp.float32) * inv_range + s_offset
            bi = bi + wi * (si * cw - cws)     # w_i * sum_{j<i} w_j (s_i - s_j)
            cw = cw + wi
            cws = cws + wi * si
            w2 = wi * wi
            uni = uni + (pw2 - w2) * si        # telescoped w_i^2 (s_{i+1}-s_i)
            return cw, cws, bi, uni, w2, si

        _, _, bi, uni, pw2, ps = lax.fori_loop(
            0, n_samples, sample_body, (zero, zero, zero, zero, zero, zero),
            unroll=sample_unroll)
        uni = uni + pw2 * ps                   # add back w_{N-1}^2 * s_{N-1}
        acc_dist = acc_dist + 2.0 * bi + uni * (1.0 / 3.0)
        return acc_rgb, acc_dist

    acc_rgb, acc_dist = lax.fori_loop(0, n_chunks, chunk_body, (zero, zero))
    rgb_ref[0, 0] = acc_rgb
    dist_ref[0, 0] = acc_dist


def pallas_fused_losses(model_out, target, weights, z_vals, near, far,
                        loss_type="l1", unnormalize_out=True,
                        block_bytes_budget=4 << 20, max_rays_per_block=32768):
    """Fused rgb + distortion loss (and optional model_out unnormalize).

    model_out / target : [B, C, N_rays]       (N_rays a multiple of 128)
    weights / z_vals   : [B, N_samples, N_rays]   (ray-last layout)
    Returns (rgb_loss, dist_loss, model_out_vis).
    """
    if loss_type not in ("l1", "l2"):
        raise ValueError(f"invalid loss type {loss_type}")
    b, c, n_rays = model_out.shape
    ns = weights.shape[1]
    if weights.shape != (b, ns, n_rays) or z_vals.shape != (b, ns, n_rays):
        raise ValueError("weights/z_vals must be ray-last [B, N_samples, N_rays]")
    if n_rays % 128 != 0:
        raise ValueError("N_rays must be a multiple of 128")

    rb = n_rays // 128                    # ray rows of 128 lanes
    rc_rows = 8 if rb % 8 == 0 else rb    # (8,128)-dense chunk when possible
    nch = rb // rc_rows                   # chunks per batch element

    # Block size: as many chunks as fit a ~4 MiB streamed block (double
    # buffered stays well under scoped-VMEM defaults on v5e/v6e/v7x).
    per_chunk = ((2 + (1 if unnormalize_out else 0)) * c
                 * model_out.dtype.itemsize
                 + ns * (weights.dtype.itemsize + z_vals.dtype.itemsize)
                 ) * rc_rows * 128
    max_tch = max(1, min(block_bytes_budget // per_chunk,
                         max_rays_per_block // (rc_rows * 128)))
    tch = 1
    for t in range(int(min(nch, max_tch)), 0, -1):
        if nch % t == 0:
            tch = t
            break
    g = nch // tch

    # Contiguous (free) reshapes: rays -> (chunks, 8, 128).
    # TODO(synk): when z_vals are shared across rays (unperturbed stratified
    # samples), the s-values could be passed via SMEM scalar prefetch instead
    # of streaming a full z tensor.
    mo5 = model_out.reshape(b, c, nch, rc_rows, 128)
    tg5 = target.reshape(b, c, nch, rc_rows, 128)
    w5 = weights.reshape(b, ns, nch, rc_rows, 128)
    z5 = z_vals.reshape(b, ns, nch, rc_rows, 128)

    inv_range = 1.0 / (float(far) - float(near))
    kernel = functools.partial(
        _fused_loss_kernel,
        loss_type=loss_type,
        inv_range=inv_range,
        s_offset=-float(near) * inv_range,
        n_samples=ns,
        n_chunks=tch,
        rc_rows=rc_rows,
        emit_img=unnormalize_out,
        sample_unroll=True if ns <= 32 else 8,
    )

    def stream_spec(leading):
        return pl.BlockSpec((1, leading, tch, rc_rows, 128),
                            lambda bi, gi: (bi, 0, gi, 0, 0))

    part_spec = pl.BlockSpec((1, 1, rc_rows, 128), lambda bi, gi: (bi, gi, 0, 0))
    part_shape = jax.ShapeDtypeStruct((b, g, rc_rows, 128), jnp.float32)

    in_specs = [stream_spec(c), stream_spec(c), stream_spec(ns), stream_spec(ns)]
    if unnormalize_out:
        out_shape = (jax.ShapeDtypeStruct((b, c, nch, rc_rows, 128),
                                          model_out.dtype),
                     part_shape, part_shape)
        out_specs = (stream_spec(c), part_spec, part_spec)
    else:
        out_shape = (part_shape, part_shape)
        out_specs = (part_spec, part_spec)

    outs = pl.pallas_call(
        kernel,
        out_shape=out_shape,
        grid=(b, g),
        in_specs=in_specs,
        out_specs=out_specs,
        compiler_params=pltpu.CompilerParams(
            dimension_semantics=("parallel", "parallel")),
    )(mo5, tg5, w5, z5)

    if unnormalize_out:
        img5, rgb_part, dist_part = outs
        img = img5.reshape(b, c, n_rays)
    else:
        rgb_part, dist_part = outs
        img = model_out            # unnormalize is identity in this case

    rgb_loss = jnp.sum(rgb_part) * (1.0 / float(b * c * n_rays))
    dist_loss = jnp.sum(dist_part) * (1.0 / float(b * n_rays))
    return rgb_loss, dist_loss, img


# ------------------------- visualization unnormalize ------------------------

def _unnormalize_pair_kernel(a_ref, b_ref, oa_ref, ob_ref):
    oa_ref[...] = ((a_ref[...] + 1.0) * 0.5).astype(oa_ref.dtype)
    ob_ref[...] = ((b_ref[...] + 1.0) * 0.5).astype(ob_ref.dtype)


def _pick_row_tile(rows, max_rows=2048):
    """Largest row tile (multiple of 8) dividing `rows`; keeps (rows,128) f32
    blocks <= ~1 MiB so 2 in + 2 out double-buffered fits v5e's 16 MiB default."""
    if rows <= max_rows:
        return rows
    t = (max_rows // 8) * 8
    while t >= 8:
        if rows % t == 0:
            return t
        t -= 8
    return rows


def pallas_unnormalize_pair(a, b):
    """(x + 1) * 0.5 on two same-shape tensors with one fused lane-dense launch."""
    if a.shape != b.shape or a.dtype != b.dtype or a.size % 128 != 0:
        # TODO(synk): tiny / oddly-sized visualization tensors; let XLA fuse.
        return (a + 1.0) * 0.5, (b + 1.0) * 0.5
    rows = a.size // 128
    fa = a.reshape(rows, 128)
    fb = b.reshape(rows, 128)
    tr = _pick_row_tile(rows)
    spec = pl.BlockSpec((tr, 128), lambda i: (i, 0))
    oa, ob = pl.pallas_call(
        _unnormalize_pair_kernel,
        out_shape=(jax.ShapeDtypeStruct((rows, 128), a.dtype),
                   jax.ShapeDtypeStruct((rows, 128), b.dtype)),
        grid=(rows // tr,),
        in_specs=[spec, spec],
        out_specs=(spec, spec),
        compiler_params=pltpu.CompilerParams(dimension_semantics=("parallel",)),
    )(fa, fb)
    return oa.reshape(a.shape), ob.reshape(b.shape)


# ------------------------------ module wrapper ------------------------------

class PixelNeRFModelWrapperPallas:
    """JAX/Pallas re-implementation of PixelNeRFModelWrapper.forward / p_losses.

    `model_fn(inp, t)` stands in for the injected PixelNeRF nn.Module and must
    return (model_out, depth, misc) with misc = {'weights', 'z_vals'}.
    """

    def __init__(self, model_fn, image_size, channels=3, near=1.0, far=2.0,
                 sampling="ray", loss_type="l1", auto_normalize=True):
        self.model_fn = model_fn
        self.image_size = image_size
        self.channels = channels
        self.near = near
        self.far = far
        self.sampling = sampling
        self.loss_type = loss_type
        self.auto_normalize = auto_normalize
        self.self_condition = False

    def p_losses(self, inp, t, add_noise=False, render_video=False):
        # TODO(synk): the real PixelNeRF encoder/renderer is an injected
        # nn.Module (not defined in the spec file); model_fn stands in for it.
        model_out, depth, misc = self.model_fn(inp, t)
        weights, z_vals = misc["weights"], misc["z_vals"]

        n_rays = model_out.shape[-1]
        if weights.shape[-1] != n_rays and weights.shape[1] == n_rays:
            # TODO(synk): renderer emitted the PyTorch [B, N_rays, N_samples]
            # layout; it should emit ray-last directly to avoid this HBM
            # round-trip transpose.
            weights = jnp.transpose(weights, (0, 2, 1))
            z_vals = jnp.transpose(z_vals, (0, 2, 1))

        target = inp["trgt_rgb_sampled"].reshape(model_out.shape)
        rgb_loss, dist_loss, model_out_vis = pallas_fused_losses(
            model_out, target, weights, z_vals, self.near, self.far,
            loss_type=self.loss_type, unnormalize_out=self.auto_normalize)

        # TODO(synk): sampling == 'patch' branch needs the pretrained
        # LPIPS(vgg) network; without its weights lpips_loss stays 0.
        lpips_loss = jnp.zeros((), jnp.float32)

        if self.auto_normalize:
            trgt_vis, ctxt_vis = pallas_unnormalize_pair(
                inp["trgt_rgb"], inp["ctxt_rgb"])
        else:
            trgt_vis, ctxt_vis = inp["trgt_rgb"], inp["ctxt_rgb"]

        # TODO(synk): render_video path needs model.render_full_image /
        # render_video; full_depths / full_images / frames stay None.
        losses = {"rgb_loss": rgb_loss, "dist_loss": dist_loss,
                  "lpips_loss": lpips_loss}
        extras = (model_out_vis, trgt_vis, ctxt_vis, t, None, None, None)
        return losses, extras

    def __call__(self, inp):
        img = inp["ctxt_rgb"]
        b, num_context = img.shape[0], img.shape[1]
        # torch .long() -> int64; JAX default on TPU is int32.
        t = jnp.zeros((b, num_context), dtype=jnp.int32)
        return self.p_losses(inp, t)


# ----------------------------------- main -----------------------------------

if __name__ == "__main__":
    key = jax.random.PRNGKey(0)
    B, NC, C, H, W = 2, 1, 3, 16, 16
    N_RAYS, N_SAMPLES = 1024, 8
    NEAR, FAR = 1.0, 2.0

    k = jax.random.split(key, 6)
    ctxt_rgb = jax.random.uniform(k[0], (B, NC, C, H, W), jnp.float32, -1.0, 1.0)
    trgt_rgb = jax.random.uniform(k[1], (B, NC, C, H, W), jnp.float32, -1.0, 1.0)
    trgt_rgb_sampled = jax.random.uniform(k[2], (B, C, N_RAYS), jnp.float32,
                                          -1.0, 1.0)
    inp = {"ctxt_rgb": ctxt_rgb, "trgt_rgb": trgt_rgb,
           "trgt_rgb_sampled": trgt_rgb_sampled}

    # Deterministic stand-in for the injected PixelNeRF renderer.  It emits
    # weights / z_vals in the ray-last layout [B, N_samples, N_rays] so the
    # loss kernel streams them without any host-side transpose.
    model_out = jax.random.uniform(k[3], (B, C, N_RAYS), jnp.float32, -1.0, 1.0)
    logits = jax.random.normal(k[4], (B, N_SAMPLES, N_RAYS), jnp.float32)
    weights = jax.nn.softmax(logits, axis=1)
    z_vals = jnp.broadcast_to(
        jnp.linspace(NEAR, FAR, N_SAMPLES)[None, :, None],
        (B, N_SAMPLES, N_RAYS))
    depth = jnp.sum(weights * z_vals, axis=1)

    def model_fn(inp, t):
        return model_out, depth, {"weights": weights, "z_vals": z_vals}

    wrapper = PixelNeRFModelWrapperPallas(model_fn, image_size=H, channels=C,
                                          near=NEAR, far=FAR,
                                          sampling="ray", loss_type="l1")
    losses, extras = wrapper(inp)
    jax.block_until_ready((losses, extras))

    # --- plain-JAX reference for a sanity check ---
    target = trgt_rgb_sampled.reshape(model_out.shape)
    rgb_ref = jnp.mean(jnp.abs(model_out - target))
    w_br = jnp.transpose(weights, (0, 2, 1))              # [B, N_rays, N_samples]
    s_br = (jnp.transpose(z_vals, (0, 2, 1)) - NEAR) / (FAR - NEAR)
    bi = jnp.sum(w_br[..., :, None] * w_br[..., None, :]
                 * jnp.abs(s_br[..., :, None] - s_br[..., None, :]),
                 axis=(-1, -2))
    uni = jnp.sum(w_br[..., :-1] ** 2 * (s_br[..., 1:] - s_br[..., :-1]),
                  axis=-1) / 3.0
    dist_ref = jnp.mean(bi + uni)

    assert jnp.allclose(losses["rgb_loss"], rgb_ref, atol=1e-5), "rgb_loss mismatch"
    assert jnp.allclose(losses["dist_loss"], dist_ref, atol=1e-5), "dist_loss mismatch"
    assert jnp.allclose(extras[0], (model_out + 1.0) * 0.5, atol=1e-6), \
        "model_out unnorm mismatch"
    assert jnp.allclose(extras[1], (trgt_rgb + 1.0) * 0.5, atol=1e-6), \
        "trgt unnorm mismatch"
    assert jnp.allclose(extras[2], (ctxt_rgb + 1.0) * 0.5, atol=1e-6), \
        "ctxt unnorm mismatch"

    print("KERNEL_OK")
</pallas_src>

<mosaic_0001>
module attributes {stable_mosaic.version = 11 : i64} {
  func.func @_fused_loss_kernel(%arg0: i32, %arg1: i32, %arg2: memref<1x3x1x8x128xf32, #tpu.memory_space<vmem>>, %arg3: memref<1x3x1x8x128xf32, #tpu.memory_space<vmem>>, %arg4: memref<1x8x1x8x128xf32, #tpu.memory_space<vmem>>, %arg5: memref<1x8x1x8x128xf32, #tpu.memory_space<vmem>>, %arg6: memref<1x3x1x8x128xf32, #tpu.memory_space<vmem>>, %arg7: memref<1x1x8x128xf32, #tpu.memory_space<vmem>>, %arg8: memref<1x1x8x128xf32, #tpu.memory_space<vmem>>) attributes {dimension_semantics = [#tpu.dimension_semantics<parallel>, #tpu.dimension_semantics<parallel>], iteration_bounds = array<i64: 2, 1>, scalar_prefetch = 0 : i64, scratch_operands = 0 : i64, tpu.core_type = #tpu.core_type<tc>, window_params = [{transform_indices = @transform_0, window_bounds = array<i64: 1, 3, 1, 8, 128>}, {transform_indices = @transform_1, window_bounds = array<i64: 1, 3, 1, 8, 128>}, {transform_indices = @transform_2, window_bounds = array<i64: 1, 8, 1, 8, 128>}, {transform_indices = @transform_3, window_bounds = array<i64: 1, 8, 1, 8, 128>}, {transform_indices = @transform_4, window_bounds = array<i64: 1, 3, 1, 8, 128>}, {transform_indices = @transform_5, window_bounds = array<i64: 1, 1, 8, 128>}, {transform_indices = @transform_6, window_bounds = array<i64: 1, 1, 8, 128>}]} {
    %cst = arith.constant 0.000000e+00 : f32
    %0 = vector.broadcast %cst : f32 to vector<8x128xf32>
    %c0 = arith.constant 0 : index
    %c0_0 = arith.constant 0 : index
    %c0_1 = arith.constant 0 : index
    %c0_2 = arith.constant 0 : index
    %c0_3 = arith.constant 0 : index
    %1 = vector.load %arg2[%c0, %c0_0, %c0_1, %c0_2, %c0_3] : memref<1x3x1x8x128xf32, #tpu.memory_space<vmem>>, vector<1x3x1x8x128xf32>
    %cst_4 = arith.constant 1.000000e+00 : f32
    %2 = vector.broadcast %cst_4 : f32 to vector<1x3x1x8x128xf32>
    %3 = arith.addf %1, %2 : vector<1x3x1x8x128xf32>
    %cst_5 = arith.constant 5.000000e-01 : f32
    %4 = vector.broadcast %cst_5 : f32 to vector<1x3x1x8x128xf32>
    %5 = arith.mulf %3, %4 : vector<1x3x1x8x128xf32>
    %c0_6 = arith.constant 0 : index
    %c0_7 = arith.constant 0 : index
    %c0_8 = arith.constant 0 : index
    %c0_9 = arith.constant 0 : index
    %c0_10 = arith.constant 0 : index
    %6 = vector.load %arg6[%c0_6, %c0_7, %c0_8, %c0_9, %c0_10] : memref<1x3x1x8x128xf32, #tpu.memory_space<vmem>>, vector<1x3x1x8x128xf32>
    tpu.vector_store %arg6[%c0_6, %c0_7, %c0_8, %c0_9, %c0_10], %5 {strides = array<i32>} : memref<1x3x1x8x128xf32, #tpu.memory_space<vmem>>, vector<1x3x1x8x128xf32>,
    %c0_i32 = arith.constant 0 : i32
    %c0_11 = arith.constant 0 : index
    %c0_12 = arith.constant 0 : index
    %7 = arith.index_cast %c0_i32 : i32 to index
    %c0_13 = arith.constant 0 : index
    %c0_14 = arith.constant 0 : index
    %8 = vector.load %arg2[%c0_11, %c0_12, %7, %c0_13, %c0_14] : memref<1x3x1x8x128xf32, #tpu.memory_space<vmem>>, vector<1x1x1x8x128xf32>
    %9 = vector.shape_cast %8 : vector<1x1x1x8x128xf32> to vector<8x128xf32>
    %c0_15 = arith.constant 0 : index
    %c0_16 = arith.constant 0 : index
    %10 = arith.index_cast %c0_i32 : i32 to index
    %c0_17 = arith.constant 0 : index
    %c0_18 = arith.constant 0 : index
    %11 = vector.load %arg3[%c0_15, %c0_16, %10, %c0_17, %c0_18] : memref<1x3x1x8x128xf32, #tpu.memory_space<vmem>>, vector<1x1x1x8x128xf32>
    %12 = vector.shape_cast %11 : vector<1x1x1x8x128xf32> to vector<8x128xf32>
    %13 = arith.subf %9, %12 : vector<8x128xf32>
    %14 = math.absf %13 : vector<8x128xf32>
    %15 = arith.addf %0, %14 : vector<8x128xf32>
    %c0_19 = arith.constant 0 : index
    %c1 = arith.constant 1 : index
    %16 = arith.index_cast %c0_i32 : i32 to index
    %c0_20 = arith.constant 0 : index
    %c0_21 = arith.constant 0 : index
    %17 = vector.load %arg2[%c0_19, %c1, %16, %c0_20, %c0_21] : memref<1x3x1x8x128xf32, #tpu.memory_space<vmem>>, vector<1x1x1x8x128xf32>
    %18 = vector.shape_cast %17 : vector<1x1x1x8x128xf32> to vector<8x128xf32>
    %c0_22 = arith.constant 0 : index
    %c1_23 = arith.constant 1 : index
    %19 = arith.index_cast %c0_i32 : i32 to index
    %c0_24 = arith.constant 0 : index
    %c0_25 = arith.constant 0 : index
    %20 = vector.load %arg3[%c0_22, %c1_23, %19, %c0_24, %c0_25] : memref<1x3x1x8x128xf32, #tpu.memory_space<vmem>>, vector<1x1x1x8x128xf32>
    %21 = vector.shape_cast %20 : vector<1x1x1x8x128xf32> to vector<8x128xf32>
    %22 = arith.subf %18, %21 : vector<8x128xf32>
    %23 = math.absf %22 : vector<8x128xf32>
    %24 = arith.addf %15, %23 : vector<8x128xf32>
    %c0_26 = arith.constant 0 : index
    %c2 = arith.constant 2 : index
    %25 = arith.index_cast %c0_i32 : i32 to index
    %c0_27 = arith.constant 0 : index
    %c0_28 = arith.constant 0 : index
    %26 = vector.load %arg2[%c0_26, %c2, %25, %c0_27, %c0_28] : memref<1x3x1x8x128xf32, #tpu.memory_space<vmem>>, vector<1x1x1x8x128xf32>
    %27 = vector.shape_cast %26 : vector<1x1x1x8x128xf32> to vector<8x128xf32>
    %c0_29 = arith.constant 0 : index
    %c2_30 = arith.constant 2 : index
    %28 = arith.index_cast %c0_i32 : i32 to index
    %c0_31 = arith.constant 0 : index
    %c0_32 = arith.constant 0 : index
    %29 = vector.load %arg3[%c0_29, %c2_30, %28, %c0_31, %c0_32] : memref<1x3x1x8x128xf32, #tpu.memory_space<vmem>>, vector<1x1x1x8x128xf32>
    %30 = vector.shape_cast %29 : vector<1x1x1x8x128xf32> to vector<8x128xf32>
    %31 = arith.subf %27, %30 : vector<8x128xf32>
    %32 = math.absf %31 : vector<8x128xf32>
    %33 = arith.addf %24, %32 : vector<8x128xf32>
    %34 = arith.addf %0, %33 : vector<8x128xf32>
    %c0_i32_33 = arith.constant 0 : i32
    %c0_34 = arith.constant 0 : index
    %35 = arith.index_cast %c0_i32_33 : i32 to index
    %36 = arith.index_cast %c0_i32 : i32 to index
    %c0_35 = arith.constant 0 : index
    %c0_36 = arith.constant 0 : index
    %37 = vector.load %arg4[%c0_34, %35, %36, %c0_35, %c0_36] : memref<1x8x1x8x128xf32, #tpu.memory_space<vmem>>, vector<1x1x1x8x128xf32>
    %38 = vector.shape_cast %37 : vector<1x1x1x8x128xf32> to vector<8x128xf32>
    %c0_37 = arith.constant 0 : index
    %39 = arith.index_cast %c0_i32_33 : i32 to index
    %40 = arith.index_cast %c0_i32 : i32 to index
    %c0_38 = arith.constant 0 : index
    %c0_39 = arith.constant 0 : index
    %41 = vector.load %arg5[%c0_37, %39, %40, %c0_38, %c0_39] : memref<1x8x1x8x128xf32, #tpu.memory_space<vmem>>, vector<1x1x1x8x128xf32>
    %42 = vector.shape_cast %41 : vector<1x1x1x8x128xf32> to vector<8x128xf32>
    %cst_40 = arith.constant 1.000000e+00 : f32
    %43 = vector.broadcast %cst_40 : f32 to vector<8x128xf32>
    %44 = arith.mulf %42, %43 : vector<8x128xf32>
    %cst_41 = arith.constant -1.000000e+00 : f32
    %45 = vector.broadcast %cst_41 : f32 to vector<8x128xf32>
    %46 = arith.addf %44, %45 : vector<8x128xf32>
    %47 = arith.mulf %46, %0 : vector<8x128xf32>
    %48 = arith.subf %47, %0 : vector<8x128xf32>
    %49 = arith.mulf %38, %48 : vector<8x128xf32>
    %50 = arith.addf %0, %49 : vector<8x128xf32>
    %51 = arith.addf %0, %38 : vector<8x128xf32>
    %52 = arith.mulf %38, %46 : vector<8x128xf32>
    %53 = arith.addf %0, %52 : vector<8x128xf32>
    %54 = arith.mulf %38, %38 : vector<8x128xf32>
    %55 = arith.subf %0, %54 : vector<8x128xf32>
    %56 = arith.mulf %55, %46 : vector<8x128xf32>
    %57 = arith.addf %0, %56 : vector<8x128xf32>
    %c1_i32 = arith.constant 1 : i32
    %c0_42 = arith.constant 0 : index
    %58 = arith.index_cast %c1_i32 : i32 to index
    %59 = arith.index_cast %c0_i32 : i32 to index
    %c0_43 = arith.constant 0 : index
    %c0_44 = arith.constant 0 : index
    %60 = vector.load %arg4[%c0_42, %58, %59, %c0_43, %c0_44] : memref<1x8x1x8x128xf32, #tpu.memory_space<vmem>>, vector<1x1x1x8x128xf32>
    %61 = vector.shape_cast %60 : vector<1x1x1x8x128xf32> to vector<8x128xf32>
    %c0_45 = arith.constant 0 : index
    %62 = arith.index_cast %c1_i32 : i32 to index
    %63 = arith.index_cast %c0_i32 : i32 to index
    %c0_46 = arith.constant 0 : index
    %c0_47 = arith.constant 0 : index
    %64 = vector.load %arg5[%c0_45, %62, %63, %c0_46, %c0_47] : memref<1x8x1x8x128xf32, #tpu.memory_space<vmem>>, vector<1x1x1x8x128xf32>
    %65 = vector.shape_cast %64 : vector<1x1x1x8x128xf32> to vector<8x128xf32>
    %cst_48 = arith.constant 1.000000e+00 : f32
    %66 = vector.broadcast %cst_48 : f32 to vector<8x128xf32>
    %67 = arith.mulf %65, %66 : vector<8x128xf32>
    %cst_49 = arith.constant -1.000000e+00 : f32
    %68 = vector.broadcast %cst_49 : f32 to vector<8x128xf32>
    %69 = arith.addf %67, %68 : vector<8x128xf32>
    %70 = arith.mulf %69, %51 : vector<8x128xf32>
    %71 = arith.subf %70, %53 : vector<8x128xf32>
    %72 = arith.mulf %61, %71 : vector<8x128xf32>
    %73 = arith.addf %50, %72 : vector<8x128xf32>
    %74 = arith.addf %51, %61 : vector<8x128xf32>
    %75 = arith.mulf %61, %69 : vector<8x128xf32>
    %76 = arith.addf %53, %75 : vector<8x128xf32>
    %77 = arith.mulf %61, %61 : vector<8x128xf32>
    %78 = arith.subf %54, %77 : vector<8x128xf32>
    %79 = arith.mulf %78, %69 : vector<8x128xf32>
    %80 = arith.addf %57, %79 : vector<8x128xf32>
    %c2_i32 = arith.constant 2 : i32
    %c0_50 = arith.constant 0 : index
    %81 = arith.index_cast %c2_i32 : i32 to index
    %82 = arith.index_cast %c0_i32 : i32 to index
    %c0_51 = arith.constant 0 : index
    %c0_52 = arith.constant 0 : index
    %83 = vector.load %arg4[%c0_50, %81, %82, %c0_51, %c0_52] : memref<1x8x1x8x128xf32, #tpu.memory_space<vmem>>, vector<1x1x1x8x128xf32>
    %84 = vector.shape_cast %83 : vector<1x1x1x8x128xf32> to vector<8x128xf32>
    %c0_53 = arith.constant 0 : index
    %85 = arith.index_cast %c2_i32 : i32 to index
    %86 = arith.index_cast %c0_i32 : i32 to index
    %c0_54 = arith.constant 0 : index
    %c0_55 = arith.constant 0 : index
    %87 = vector.load %arg5[%c0_53, %85, %86, %c0_54, %c0_55] : memref<1x8x1x8x128xf32, #tpu.memory_space<vmem>>, vector<1x1x1x8x128xf32>
    %88 = vector.shape_cast %87 : vector<1x1x1x8x128xf32> to vector<8x128xf32>
    %cst_56 = arith.constant 1.000000e+00 : f32
    %89 = vector.broadcast %cst_56 : f32 to vector<8x128xf32>
    %90 = arith.mulf %88, %89 : vector<8x128xf32>
    %cst_57 = arith.constant -1.000000e+00 : f32
    %91 = vector.broadcast %cst_57 : f32 to vector<8x128xf32>
    %92 = arith.addf %90, %91 : vector<8x128xf32>
    %93 = arith.mulf %92, %74 : vector<8x128xf32>
    %94 = arith.subf %93, %76 : vector<8x128xf32>
    %95 = arith.mulf %84, %94 : vector<8x128xf32>
    %96 = arith.addf %73, %95 : vector<8x128xf32>
    %97 = arith.addf %74, %84 : vector<8x128xf32>
    %98 = arith.mulf %84, %92 : vector<8x128xf32>
    %99 = arith.addf %76, %98 : vector<8x128xf32>
    %100 = arith.mulf %84, %84 : vector<8x128xf32>
    %101 = arith.subf %77, %100 : vector<8x128xf32>
    %102 = arith.mulf %101, %92 : vector<8x128xf32>
    %103 = arith.addf %80, %102 : vector<8x128xf32>
    %c3_i32 = arith.constant 3 : i32
    %c0_58 = arith.constant 0 : index
    %104 = arith.index_cast %c3_i32 : i32 to index
    %105 = arith.index_cast %c0_i32 : i32 to index
    %c0_59 = arith.constant 0 : index
    %c0_60 = arith.constant 0 : index
    %106 = vector.load %arg4[%c0_58, %104, %105, %c0_59, %c0_60] : memref<1x8x1x8x128xf32, #tpu.memory_space<vmem>>, vector<1x1x1x8x128xf32>
    %107 = vector.shape_cast %106 : vector<1x1x1x8x128xf32> to vector<8x128xf32>
    %c0_61 = arith.constant 0 : index
    %108 = arith.index_cast %c3_i32 : i32 to index
    %109 = arith.index_cast %c0_i32 : i32 to index
    %c0_62 = arith.constant 0 : index
    %c0_63 = arith.constant 0 : index
    %110 = vector.load %arg5[%c0_61, %108, %109, %c0_62, %c0_63] : memref<1x8x1x8x128xf32, #tpu.memory_space<vmem>>, vector<1x1x1x8x128xf32>
    %111 = vector.shape_cast %110 : vector<1x1x1x8x128xf32> to vector<8x128xf32>
    %cst_64 = arith.constant 1.000000e+00 : f32
    %112 = vector.broadcast %cst_64 : f32 to vector<8x128xf32>
    %113 = arith.mulf %111, %112 : vector<8x128xf32>
    %cst_65 = arith.constant -1.000000e+00 : f32
    %114 = vector.broadcast %cst_65 : f32 to vector<8x128xf32>
    %115 = arith.addf %113, %114 : vector<8x128xf32>
    %116 = arith.mulf %115, %97 : vector<8x128xf32>
    %117 = arith.subf %116, %99 : vector<8x128xf32>
    %118 = arith.mulf %107, %117 : vector<8x128xf32>
    %119 = arith.addf %96, %118 : vector<8x128xf32>
    %120 = arith.addf %97, %107 : vector<8x128xf32>
    %121 = arith.mulf %107, %115 : vector<8x128xf32>
    %122 = arith.addf %99, %121 : vector<8x128xf32>
    %123 = arith.mulf %107, %107 : vector<8x128xf32>
    %124 = arith.subf %100, %123 : vector<8x128xf32>
    %125 = arith.mulf %124, %115 : vector<8x128xf32>
    %126 = arith.addf %103, %125 : vector<8x128xf32>
    %c4_i32 = arith.constant 4 : i32
    %c0_66 = arith.constant 0 : index
    %127 = arith.index_cast %c4_i32 : i32 to index
    %128 = arith.index_cast %c0_i32 : i32 to index
    %c0_67 = arith.constant 0 : index
    %c0_68 = arith.constant 0 : index
    %129 = vector.load %arg4[%c0_66, %127, %128, %c0_67, %c0_68] : memref<1x8x1x8x128xf32, #tpu.memory_space<vmem>>, vector<1x1x1x8x128xf32>
    %130 = vector.shape_cast %129 : vector<1x1x1x8x128xf32> to vector<8x128xf32>
    %c0_69 = arith.constant 0 : index
    %131 = arith.index_cast %c4_i32 : i32 to index
    %132 = arith.index_cast %c0_i32 : i32 to index
    %c0_70 = arith.constant 0 : index
    %c0_71 = arith.constant 0 : index
    %133 = vector.load %arg5[%c0_69, %131, %132, %c0_70, %c0_71] : memref<1x8x1x8x128xf32, #tpu.memory_space<vmem>>, vector<1x1x1x8x128xf32>
    %134 = vector.shape_cast %133 : vector<1x1x1x8x128xf32> to vector<8x128xf32>
    %cst_72 = arith.constant 1.000000e+00 : f32
    %135 = vector.broadcast %cst_72 : f32 to vector<8x128xf32>
    %136 = arith.mulf %134, %135 : vector<8x128xf32>
    %cst_73 = arith.constant -1.000000e+00 : f32
    %137 = vector.broadcast %cst_73 : f32 to vector<8x128xf32>
    %138 = arith.addf %136, %137 : vector<8x128xf32>
    %139 = arith.mulf %138, %120 : vector<8x128xf32>
    %140 = arith.subf %139, %122 : vector<8x128xf32>
    %141 = arith.mulf %130, %140 : vector<8x128xf32>
    %142 = arith.addf %119, %141 : vector<8x128xf32>
    %143 = arith.addf %120, %130 : vector<8x128xf32>
    %144 = arith.mulf %130, %138 : vector<8x128xf32>
    %145 = arith.addf %122, %144 : vector<8x128xf32>
    %146 = arith.mulf %130, %130 : vector<8x128xf32>
    %147 = arith.subf %123, %146 : vector<8x128xf32>
    %148 = arith.mulf %147, %138 : vector<8x128xf32>
    %149 = arith.addf %126, %148 : vector<8x128xf32>
    %c5_i32 = arith.constant 5 : i32
    %c0_74 = arith.constant 0 : index
    %150 = arith.index_cast %c5_i32 : i32 to index
    %151 = arith.index_cast %c0_i32 : i32 to index
    %c0_75 = arith.constant 0 : index
    %c0_76 = arith.constant 0 : index
    %152 = vector.load %arg4[%c0_74, %150, %151, %c0_75, %c0_76] : memref<1x8x1x8x128xf32, #tpu.memory_space<vmem>>, vector<1x1x1x8x128xf32>
    %153 = vector.shape_cast %152 : vector<1x1x1x8x128xf32> to vector<8x128xf32>
    %c0_77 = arith.constant 0 : index
    %154 = arith.index_cast %c5_i32 : i32 to index
    %155 = arith.index_cast %c0_i32 : i32 to index
    %c0_78 = arith.constant 0 : index
    %c0_79 = arith.constant 0 : index
    %156 = vector.load %arg5[%c0_77, %154, %155, %c0_78, %c0_79] : memref<1x8x1x8x128xf32, #tpu.memory_space<vmem>>, vector<1x1x1x8x128xf32>
    %157 = vector.shape_cast %156 : vector<1x1x1x8x128xf32> to vector<8x128xf32>
    %cst_80 = arith.constant 1.000000e+00 : f32
    %158 = vector.broadcast %cst_80 : f32 to vector<8x128xf32>
    %159 = arith.mulf %157, %158 : vector<8x128xf32>
    %cst_81 = arith.constant -1.000000e+00 : f32
    %160 = vector.broadcast %cst_81 : f32 to vector<8x128xf32>
    %161 = arith.addf %159, %160 : vector<8x128xf32>
    %162 = arith.mulf %161, %143 : vector<8x128xf32>
    %163 = arith.subf %162, %145 : vector<8x128xf32>
    %164 = arith.mulf %153, %163 : vector<8x128xf32>
    %165 = arith.addf %142, %164 : vector<8x128xf32>
    %166 = arith.addf %143, %153 : vector<8x128xf32>
    %167 = arith.mulf %153, %161 : vector<8x128xf32>
    %168 = arith.addf %145, %167 : vector<8x128xf32>
    %169 = arith.mulf %153, %153 : vector<8x128xf32>
    %170 = arith.subf %146, %169 : vector<8x128xf32>
    %171 = arith.mulf %170, %161 : vector<8x128xf32>
    %172 = arith.addf %149, %171 : vector<8x128xf32>
    %c6_i32 = arith.constant 6 : i32
    %c0_82 = arith.constant 0 : index
    %173 = arith.index_cast %c6_i32 : i32 to index
    %174 = arith.index_cast %c0_i32 : i32 to index
    %c0_83 = arith.constant 0 : index
    %c0_84 = arith.constant 0 : index
    %175 = vector.load %arg4[%c0_82, %173, %174, %c0_83, %c0_84] : memref<1x8x1x8x128xf32, #tpu.memory_space<vmem>>, vector<1x1x1x8x128xf32>
    %176 = vector.shape_cast %175 : vector<1x1x1x8x128xf32> to vector<8x128xf32>
    %c0_85 = arith.constant 0 : index
    %177 = arith.index_cast %c6_i32 : i32 to index
    %178 = arith.index_cast %c0_i32 : i32 to index
    %c0_86 = arith.constant 0 : index
    %c0_87 = arith.constant 0 : index
    %179 = vector.load %arg5[%c0_85, %177, %178, %c0_86, %c0_87] : memref<1x8x1x8x128xf32, #tpu.memory_space<vmem>>, vector<1x1x1x8x128xf32>
    %180 = vector.shape_cast %179 : vector<1x1x1x8x128xf32> to vector<8x128xf32>
    %cst_88 = arith.constant 1.000000e+00 : f32
    %181 = vector.broadcast %cst_88 : f32 to vector<8x128xf32>
    %182 = arith.mulf %180, %181 : vector<8x128xf32>
    %cst_89 = arith.constant -1.000000e+00 : f32
    %183 = vector.broadcast %cst_89 : f32 to vector<8x128xf32>
    %184 = arith.addf %182, %183 : vector<8x128xf32>
    %185 = arith.mulf %184, %166 : vector<8x128xf32>
    %186 = arith.subf %185, %168 : vector<8x128xf32>
    %187 = arith.mulf %176, %186 : vector<8x128xf32>
    %188 = arith.addf %165, %187 : vector<8x128xf32>
    %189 = arith.addf %166, %176 : vector<8x128xf32>
    %190 = arith.mulf %176, %184 : vector<8x128xf32>
    %191 = arith.addf %168, %190 : vector<8x128xf32>
    %192 = arith.mulf %176, %176 : vector<8x128xf32>
    %193 = arith.subf %169, %192 : vector<8x128xf32>
    %194 = arith.mulf %193, %184 : vector<8x128xf32>
    %195 = arith.addf %172, %194 : vector<8x128xf32>
    %c7_i32 = arith.constant 7 : i32
    %c0_90 = arith.constant 0 : index
    %196 = arith.index_cast %c7_i32 : i32 to index
    %197 = arith.index_cast %c0_i32 : i32 to index
    %c0_91 = arith.constant 0 : index
    %c0_92 = arith.constant 0 : index
    %198 = vector.load %arg4[%c0_90, %196, %197, %c0_91, %c0_92] : memref<1x8x1x8x128xf32, #tpu.memory_space<vmem>>, vector<1x1x1x8x128xf32>
    %199 = vector.shape_cast %198 : vector<1x1x1x8x128xf32> to vector<8x128xf32>
    %c0_93 = arith.constant 0 : index
    %200 = arith.index_cast %c7_i32 : i32 to index
    %201 = arith.index_cast %c0_i32 : i32 to index
    %c0_94 = arith.constant 0 : index
    %c0_95 = arith.constant 0 : index
    %202 = vector.load %arg5[%c0_93, %200, %201, %c0_94, %c0_95] : memref<1x8x1x8x128xf32, #tpu.memory_space<vmem>>, vector<1x1x1x8x128xf32>
    %203 = vector.shape_cast %202 : vector<1x1x1x8x128xf32> to vector<8x128xf32>
    %cst_96 = arith.constant 1.000000e+00 : f32
    %204 = vector.broadcast %cst_96 : f32 to vector<8x128xf32>
    %205 = arith.mulf %203, %204 : vector<8x128xf32>
    %cst_97 = arith.constant -1.000000e+00 : f32
    %206 = vector.broadcast %cst_97 : f32 to vector<8x128xf32>
    %207 = arith.addf %205, %206 : vector<8x128xf32>
    %208 = arith.mulf %207, %189 : vector<8x128xf32>
    %209 = arith.subf %208, %191 : vector<8x128xf32>
    %210 = arith.mulf %199, %209 : vector<8x128xf32>
    %211 = arith.addf %188, %210 : vector<8x128xf32>
    %212 = arith.addf %189, %199 : vector<8x128xf32>
    %213 = arith.mulf %199, %207 : vector<8x128xf32>
    %214 = arith.addf %191, %213 : vector<8x128xf32>
    %215 = arith.mulf %199, %199 : vector<8x128xf32>
    %216 = arith.subf %192, %215 : vector<8x128xf32>
    %217 = arith.mulf %216, %207 : vector<8x128xf32>
    %218 = arith.addf %195, %217 : vector<8x128xf32>
    %c8_i32 = arith.constant 8 : i32
    %219 = arith.mulf %215, %207 : vector<8x128xf32>
    %220 = arith.addf %218, %219 : vector<8x128xf32>
    %cst_98 = arith.constant 2.000000e+00 : f32
    %221 = vector.broadcast %cst_98 : f32 to vector<8x128xf32>
    %222 = arith.mulf %221, %211 : vector<8x128xf32>
    %223 = arith.addf %0, %222 : vector<8x128xf32>
    %cst_99 = arith.constant 0.333333343 : f32
    %224 = vector.broadcast %cst_99 : f32 to vector<8x128xf32>
    %225 = arith.mulf %220, %224 : vector<8x128xf32>
    %226 = arith.addf %223, %225 : vector<8x128xf32>
    %c1_i32_100 = arith.constant 1 : i32
    %c0_101 = arith.constant 0 : index
    %c0_102 = arith.constant 0 : index
    %c0_103 = arith.constant 0 : index
    %c0_104 = arith.constant 0 : index
    %227 = vector.load %arg7[%c0_101, %c0_102, %c0_103, %c0_104] : memref<1x1x8x128xf32, #tpu.memory_space<vmem>>, vector<1x1x8x128xf32>
    %228 = vector.shape_cast %227 : vector<1x1x8x128xf32> to vector<8x128xf32>
    %229 = vector.shape_cast %34 : vector<8x128xf32> to vector<1x1x8x128xf32>
    tpu.vector_store %arg7[%c0_101, %c0_102, %c0_103, %c0_104], %229 {strides = array<i32>} : memref<1x1x8x128xf32, #tpu.memory_space<vmem>>, vector<1x1x8x128xf32>,
    %c0_105 = arith.constant 0 : index
    %c0_106 = arith.constant 0 : index
    %c0_107 = arith.constant 0 : index
    %c0_108 = arith.constant 0 : index
    %230 = vector.load %arg8[%c0_105, %c0_106, %c0_107, %c0_108] : memref<1x1x8x128xf32, #tpu.memory_space<vmem>>, vector<1x1x8x128xf32>
    %231 = vector.shape_cast %230 : vector<1x1x8x128xf32> to vector<8x128xf32>
    %232 = vector.shape_cast %226 : vector<8x128xf32> to vector<1x1x8x128xf32>
    tpu.vector_store %arg8[%c0_105, %c0_106, %c0_107, %c0_108], %232 {strides = array<i32>} : memref<1x1x8x128xf32, #tpu.memory_space<vmem>>, vector<1x1x8x128xf32>,
    return
  }
  func.func @transform_0(%arg0: i32, %arg1: i32) -> (i32, i32, i32, i32, i32) {
    %c0_i32 = arith.constant 0 : i32
    %c0_i32_0 = arith.constant 0 : i32
    %c0_i32_1 = arith.constant 0 : i32
    %c0_i32_2 = arith.constant 0 : i32
    return %arg0, %c0_i32, %arg1, %c0_i32_0, %c0_i32_1 : i32, i32, i32, i32, i32
  }
  func.func @transform_1(%arg0: i32, %arg1: i32) -> (i32, i32, i32, i32, i32) {
    %c0_i32 = arith.constant 0 : i32
    %c0_i32_0 = arith.constant 0 : i32
    %c0_i32_1 = arith.constant 0 : i32
    %c0_i32_2 = arith.constant 0 : i32
    return %arg0, %c0_i32, %arg1, %c0_i32_0, %c0_i32_1 : i32, i32, i32, i32, i32
  }
  func.func @transform_2(%arg0: i32, %arg1: i32) -> (i32, i32, i32, i32, i32) {
    %c0_i32 = arith.constant 0 : i32
    %c0_i32_0 = arith.constant 0 : i32
    %c0_i32_1 = arith.constant 0 : i32
    %c0_i32_2 = arith.constant 0 : i32
    return %arg0, %c0_i32, %arg1, %c0_i32_0, %c0_i32_1 : i32, i32, i32, i32, i32
  }
  func.func @transform_3(%arg0: i32, %arg1: i32) -> (i32, i32, i32, i32, i32) {
    %c0_i32 = arith.constant 0 : i32
    %c0_i32_0 = arith.constant 0 : i32
    %c0_i32_1 = arith.constant 0 : i32
    %c0_i32_2 = arith.constant 0 : i32
    return %arg0, %c0_i32, %arg1, %c0_i32_0, %c0_i32_1 : i32, i32, i32, i32, i32
  }
  func.func @transform_4(%arg0: i32, %arg1: i32) -> (i32, i32, i32, i32, i32) {
    %c0_i32 = arith.constant 0 : i32
    %c0_i32_0 = arith.constant 0 : i32
    %c0_i32_1 = arith.constant 0 : i32
    %c0_i32_2 = arith.constant 0 : i32
    return %arg0, %c0_i32, %arg1, %c0_i32_0, %c0_i32_1 : i32, i32, i32, i32, i32
  }
  func.func @transform_5(%arg0: i32, %arg1: i32) -> (i32, i32, i32, i32) {
    %c0_i32 = arith.constant 0 : i32
    %c0_i32_0 = arith.constant 0 : i32
    %c0_i32_1 = arith.constant 0 : i32
    return %arg0, %arg1, %c0_i32, %c0_i32_0 : i32, i32, i32, i32
  }
  func.func @transform_6(%arg0: i32, %arg1: i32) -> (i32, i32, i32, i32) {
    %c0_i32 = arith.constant 0 : i32
    %c0_i32_0 = arith.constant 0 : i32
    %c0_i32_1 = arith.constant 0 : i32
    return %arg0, %arg1, %c0_i32, %c0_i32_0 : i32, i32, i32, i32
  }
}

</mosaic_0001>

<bundles_post_ra>
// kernel: tpu_custom_call.1
= control target key start
LH: loop header
LB: loop body
LE: loop exit
PB: predicated region body
PF: predicated region fallthrough
CT: control target
= control target key end

     0   :  { %s1645_s0 = inlined_call_operand.hbm [shape: f32[2,3,1,8,128], index: 0, kind: input, shape index: {}]   ;;  %s1646_s1 = inlined_call_operand.hbm [shape: f32[2,3,1,8,128], index: 1, kind: input, shape index: {}]   ;;  %s1647_s2 = inlined_call_operand.hbm [shape: f32[2,8,1,8,128], index: 2, kind: input, shape index: {}]   ;;  %s1648_s3 = inlined_call_operand.hbm [shape: f32[2,8,1,8,128], index: 3, kind: input, shape index: {}]   ;;  %s1649_s4 = inlined_call_operand.hbm [shape: f32[2,3,1,8,128], index: 4, kind: output, shape index: {0}]   ;;  %s1650_s5 = inlined_call_operand.hbm [shape: f32[2,1,8,128], index: 5, kind: output, shape index: {1}]   ;;  %s1651_s6 = inlined_call_operand.hbm [shape: f32[2,1,8,128], index: 6, kind: output, shape index: {2}]  }
   0x1   :  { %1659 = sst [smem:[#allocation25_spill]] %s1645_s0 }
   0x2   :  { %1660 = sst [smem:[#allocation26_spill]] %s1646_s1 }
   0x3   :  { %12 = vsyncpa [#allocation3], 0 }
   0x4   :  { %14 = vsyncpa [#allocation3 + $0x1], 0 }
   0x5   :  { %15 = vsyncpa [#allocation6], 0 }
   0x6   :  { %17 = vsyncpa [#allocation6 + $0x1], 0 }
   0x7   :  { %18 = vsyncpa [#allocation9], 0 }
   0x8   :  { %20 = vsyncpa [#allocation9 + $0x1], 0 }
   0x9   :  { %21 = vsyncpa [#allocation4], 0 }
   0xa   :  { %23 = vsyncpa [#allocation4 + $0x1], 0 }
   0xb   :  { %24 = vsyncpa [#allocation12], 0 }
   0xc   :  { %26 = vsyncpa [#allocation12 + $0x1], 0  ;;  %s1336_s21 = smov 0   ;;  %s1338_s22 = smov 0  }
   0xd   :  { %s1340_s23 = smov 0   ;;  %s1342_s24 = smov 0  }
   0xe   :  { %s1344_s25 = smov 0   ;;  %s1346_s26 = smov 0  }
   0xf LB: > { %1661 = sst [smem:[#allocation19_spill]] %s1275_s21  ;;  %s1367_s27 = sadd.s32 4294967295, %s1295_s26   ;;  %s1295_s26 = sphi %s1346_s26, %s32_s26   ;;  %s1291_s25 = sphi %s1344_s25, %s1685_s25   ;;  %s1287_s24 = sphi %s1342_s24, %s1684_s24   ;;  %s1283_s23 = sphi %s1340_s23, %s1680_s23   ;;  %s1279_s22 = sphi %s1338_s22, %s1683_s22   ;;  %s1275_s21 = sphi %s1336_s21, %s1682_s21  }
  0x10   : > { %1662 = sst [smem:[#allocation20_spill]] %s1283_s23  ;;  %s1652_s28 = sadd.s32 4294967294, %s1295_s26  }
  0x11   : > { %1663 = sst [smem:[#allocation21_spill]] %s1295_s26  ;;  %s44_s29 = sadd.s32 1, %s1291_s25 }
  0x12   : > { %s53_s30 = sadd.s32 1, %s1283_s23  ;;  %p46_p0 = scmp.ge.s32.totalorder %s44_s29, 2 }
  0x13   : > { %p60_p1 = scmp.ne.s32.totalorder %s1283_s23, %s1279_s22  ;;  %p61_p2 = scmp.eq.s32.totalorder %s1295_s26, 0 }
  0x14   : > { %p66_p3 = scmp.ne.s32.totalorder %s1279_s22, %s1275_s21  ;;  %s1687_s29 = smov (%p46_p0, %s44_s29), 0 }
  0x15   : > { %1664 = sst [smem:[#allocation22_spill]] %s1687_s29  ;;  %p1379_p4 = por %p61_p2, %p60_p1 }
  0x16   : > { %p67_p5 = scmp.eq.s32.totalorder %s1367_s27, 0  ;;  %s48_s8 = ssub.s32 %s1291_s25, %s1687_s29 }
  0x17   : > { %p176_p6 = scmp.eq.s32.totalorder %s1367_s27, 1  ;;  %p51_p7 = scmp.eq.s32.totalorder %s48_s8, 0 }
  0x18   : > { %p1387_p8 = por %p67_p5, %p66_p3  ;;  %p182_p10 = scmp.eq.s32.totalorder %s1652_s28, 1 }
  0x19   : > { %p1391_p9 = por %p176_p6, %p60_p1  ;;  %p887_p12 = scmp.ge.s32.totalorder %s1295_s26, 2 }
  0x1a   : > { %s1398_s11 = scalar_select %p51_p7, %s1283_s23, %s53_s30  }
  0x1b   : > { %p1400_p11 = por %p182_p10, %p66_p3  ;;  %p971_p13 = scmp.lt.s32.totalorder %s1295_s26, 2 }
  0x1c   : > { %1668 = sst [smem:[#allocation23_spill]] %s1398_s11  ;;  %s1407_s13 = sand.u32 1, %s1283_s23  }
  0x1d   : > { %s1669_s12 = scalar_select %p1400_p11, 1, 0 }
  0x1e   : > { %s928_s14 = smul.u32 24, %s1407_s13  ;;  %p1413_p0 = pnand %p971_p13, %p1379_p4 }
  0x1f   : > { %1670 = sst [smem:[#allocation24_spill]] %s1669_s12  ;;  %s929_s15 = smul.u32 24, %s1291_s25 }
  0x20   : > { %s281_s17 = sand.u32 1, %s1295_s26   ;;  %s1672_s1 = sld [smem:[#allocation26_spill]] }
  0x21   : > { %s285_s8 = scalar_lea.vmem [#allocation5], %s928_s14  ;;  %s282_s29 = scalar_lea.sflag [#allocation6], %s281_s17 }
  0x22   : > { %s294_s28 = sshll.u32 %s285_s8, 4  ;;  %s1297_s7 = smov 128   ;;  %s295_s28 = int_to_ptr.vmem [resolvable:$true] %s294_s28 }
  0x23   : > { %s1298_s11 = smov 8   ;;  %p896_p1 = scmp.ge.s32.totalorder %s1295_s26, 1 }
  0x24   : > { %p348_p2 = scmp.lt.s32.totalorder %s1295_s26, 3  ;;  %s1674_s0 = sld [smem:[#allocation25_spill]] }
  0x25   : > { %s259_s12 = scalar_lea.sflag [#allocation3], %s1407_s13  ;;  %s328_s21 = scalar_lea.sflag [#allocation9], %s1407_s13 }
  0x26   : > { %s291_s20 = scalar_lea.hbm %s1672_s1, %s929_s15  ;;  %p1428_p3 = pnand %p896_p1, %p348_p2 }
  0x27   : > { %s292_s30 = sshll.u32 %s291_s20, 4  ;;  %s262_s1 = scalar_lea.vmem [#allocation2], %s928_s14  ;;  %s293_s30 = int_to_ptr.hbm [resolvable:$true] %s292_s30 }
  0x28   : > { %954 = dma.hbm_to_vmem [thread:$0]  (!%p1413_p0), %s293_s30, 384, %s295_s28, %s282_s29, %s1297_s7, %s1297_s7, %s1298_s11  }
  0x29   : > { %s271_s23 = sshll.u32 %s262_s1, 4  ;;  %s890_s28 = sshll.u32 %s1407_s13, 6  ;;  %s272_s23 = int_to_ptr.vmem [resolvable:$true] %s271_s23 }
  0x2a   : > { %s268_s8 = scalar_lea.hbm %s1674_s0, %s929_s15  ;;  %s926_s30 = sshll.u32 %s1291_s25, 6 }
  0x2b   : > { %s269_s17 = sshll.u32 %s268_s8, 4  ;;  %s314_s15 = scalar_lea.hbm %s1647_s2, %s926_s30  ;;  %s270_s17 = int_to_ptr.hbm [resolvable:$true] %s269_s17 }
  0x2c   : > { %951 = dma.hbm_to_vmem [thread:$0]  (!%p1413_p0), %s270_s17, 384, %s272_s23, %s259_s12, %s1297_s7, %s1297_s7, %s1298_s11  }
  0x2d   : > { %s315_s19 = sshll.u32 %s314_s15, 4  ;;  %s308_s20 = scalar_lea.vmem [#allocation7], %s890_s28  ;;  %s316_s19 = int_to_ptr.hbm [resolvable:$true] %s315_s19 }
  0x2e   : > { %s317_s14 = sshll.u32 %s308_s20, 4  ;;  %s337_s12 = scalar_lea.hbm %s1648_s3, %s926_s30  ;;  %s318_s14 = int_to_ptr.vmem [resolvable:$true] %s317_s14 }
  0x2f   : > { %957 = dma.hbm_to_vmem [thread:$0]  (!%p1413_p0), %s316_s19, 1024, %s318_s14, %s282_s29, %s1297_s7, %s1297_s7, %s1298_s11  }
  0x30   : > { %s331_s8 = scalar_lea.vmem [#allocation8], %s890_s28  ;;  %s338_s0 = sshll.u32 %s337_s12, 4  ;;  %s339_s0 = int_to_ptr.hbm [resolvable:$true] %s338_s0 }
  0x31   : > { %s340_s17 = sshll.u32 %s331_s8, 4  ;;  %352 = sbr.rel (%p1428_p3) target bundleno = 121 (0x79), region = 36  ;;  %s341_s17 = int_to_ptr.vmem [resolvable:$true] %s340_s17 }
  0x32   : > { %960 = dma.hbm_to_vmem [thread:$0]  (!%p1413_p0), %s339_s0, 1024, %s341_s17, %s328_s21, %s1297_s7, %s1297_s7, %s1298_s11  }
  0x33   : > { %s1463_s26 = sand.u32 (!%p1428_p3), 1, %s1279_s22  }
  0x34   : > { %s932_s29 = smul.u32 (!%p1428_p3), 24, %s1463_s26  ;;  %s355_s28 = scalar_lea.sflag (!%p1428_p3), [#allocation3], %s1463_s26 }
  0x36   : > { %s358_s30 = scalar_lea.vmem [#allocation2], %s932_s29 }
  0x37   : > { %1254 = dma.done.wait (%p1387_p8), %s355_s28, 384  }
  0x38   : > { %1256 = vsyncadd (%p1387_p8), %s355_s28, 4294966912  ;;  %s364_s0 = sand.u32 1, %s1367_s27   ;;  %s368_s13 = scalar_lea.vmem [#allocation5], %s932_s29 }
  0x39   : > { %s365_s11 = scalar_lea.sflag [#allocation6], %s364_s0 }
  0x3a   : > { %1258 = dma.done.wait (%p1387_p8), %s365_s11, 1408  }
  0x3b   : > { %1260 = vsyncadd (%p1387_p8), %s365_s11, 4294965888  ;;  %s897_s16 = sshll.u32 %s1463_s26, 6  ;;  %s385_s18 = scalar_lea.sflag [#allocation9], %s1463_s26 }
  0x3c   : > { %s1479_s7 = scalar_lea.vmem [#allocation7], %s897_s16  ;;  %s1482_s15 = scalar_lea.vmem [#allocation8], %s897_s16 }
  0x3d   : > { %1262 = dma.done.wait (%p1387_p8), %s385_s18, 1024  }
  0x3e   : > { %1264 = vsyncadd (%p1387_p8), %s385_s18, 4294966272  ;;  %s899_s19 = sshll.u32 %s1463_s26, 3  ;;  %s922_s20 = sshll.u32 %s1287_s24, 3  ;;  %v455_v0 = vld [vmem:[%s358_s30] sm:$0xff]  ;;  %v456_v1 = vld [vmem:[%s368_s13] sm:$0xff] }
  0x3f   : > { %v901_v2 = vld [vmem:[%s358_s30 + $0x8] sm:$0xff]  ;;  %s1490_s14 = scalar_lea.vmem [#allocation10], %s932_s29  ;;  %v457_v3 = vsub.f32 %v455_v0, %v456_v1  ;;  %v902_v4 = vld [vmem:[%s368_s13 + $0x8] sm:$0xff]  ;;  %v903_v5 = vld [vmem:[%s358_s30 + $0x10] sm:$0xff]  ;;  %v446_v7 = vadd.f32 1.0, %v455_v0  ;;  %s1498_s12 = scalar_lea.hbm %s1650_s5, %s922_s20 }
  0x40   : > { %s629_s1 = sshll.u32 %s1490_s14, 4  ;;  %v904_v6 = vld [vmem:[%s368_s13 + $0x10] sm:$0xff]  ;;  %v447_v8 = vadd.f32 1.0, %v901_v2  ;;  %v464_v9 = vsub.f32 %v901_v2, %v902_v4  ;;  %s1502_s8 = scalar_lea.vmem [#allocation11], %s899_s19  ;;  %v448_v11 = vadd.f32 1.0, %v903_v5  ;;  %v1508_v14 = vld [vmem:[%s1479_s7 + $0x8] sm:$0xff]  ;;  %s1511_s1 = int_to_ptr.vmem [resolvable:$true] %s629_s1 }
  0x41   : > { %v471_v10 = vsub.f32 %v903_v5, %v904_v6  ;;  %s647_s17 = sshll.u32 %s1502_s8, 4  ;;  %v475_v12 = vld [vmem:[%s1479_s7] sm:$0xff]  ;;  %s933_s21 = smul.u32 24, %s1287_s24  ;;  %v458_v15 = vand.u32 2147483647, %v457_v3  ;;  %v449_v16 = vmul.f32 0.5, %v446_v7  ;;  %v1524_v31 = vmul.f32 %v1508_v14, %v1508_v14  ;;  %s1535_s17 = int_to_ptr.vmem [resolvable:$true] %s647_s17 }
  0x42   : > { %v476_v13 = vld [vmem:[%s1482_s15] sm:$0xff]  ;;  %v450_v17 = vmul.f32 0.5, %v447_v8  ;;  %v906_v19 = vld [vmem:[%s1482_s15 + $0x8] sm:$0xff]  ;;  %v465_v20 = vand.u32 2147483647, %v464_v9  ;;  %v451_v22 = vmul.f32 0.5, %v448_v11  ;;  %v484_v23 = vmul.f32 %v475_v12, %v475_v12 }
  0x43   : > { %v477_v18 = vadd.f32 -1.0, %v476_v13  ;;  %v472_v21 = vand.u32 2147483647, %v471_v10  ;;  %s649_s29 = sshll.u32 %s1498_s12, 4  ;;  %s628_s11 = scalar_lea.hbm %s1649_s4, %s933_s21  ;;  %452 = vst [vmem:[%s1490_s14] sm:$0xff] %v449_v16  ;;  %v492_v26 = vadd.f32 -1.0, %v906_v19  ;;  %v497_v27 = vadd.f32 %v1508_v14, %v475_v12  ;;  %v908_v28 = vld [vmem:[%s1482_s15 + $0x10] sm:$0xff]  ;;  %s1546_s29 = int_to_ptr.hbm [resolvable:$true] %s649_s29 }
  0x44   : > { %s631_s13 = sshll.u32 %s628_s11, 4  ;;  %v466_v29 = vadd.f32 %v465_v20, %v458_v15  ;;  %453 = vst [vmem:[%s1490_s14 + $0x8] sm:$0xff] %v450_v17  ;;  %v485_v30 = vsub.f32 0.0, %v484_v23  ;;  %v1527_v32 = vld [vmem:[%s1479_s7 + $0x10] sm:$0xff]  ;;  %v1529_v33 = vadd.f32 -1.0, %v908_v28  ;;  %v1541_v38 = vld [vmem:[%s1479_s7 + $0x18] sm:$0xff]  ;;  %v501_v42 = vsub.f32 %v484_v23, %v1524_v31  ;;  %s1531_s13 = int_to_ptr.hbm [resolvable:$true] %s631_s13 }
  0x45   : > { %v478_v24 = vmul.f32 0.0, %v477_v18  ;;  %v482_v25 = vmul.f32 %v477_v18, %v475_v12  ;;  %454 = vst [vmem:[%s1490_s14 + $0x10] sm:$0xff] %v451_v22  ;;  %v493_v35 = vmul.f32 %v492_v26, %v475_v12  ;;  %v498_v36 = vmul.f32 %v1508_v14, %v492_v26  ;;  %v910_v39 = vld [vmem:[%s1482_s15 + $0x18] sm:$0xff]  ;;  %s606_s16 = scalar_lea.sflag [#allocation4], %s1463_s26  ;;  %s1159_s18 = sshra.s32 %s1531_s13, 4  ;;  %s1160_s18 = int_to_ptr.hbm [resolvable:$true] %s1159_s18 }
  0x46   : > { %v513_v37 = vadd.f32 %v1527_v32, %v497_v27  ;;  %v473_v40 = vadd.f32 %v472_v21, %v466_v29  ;;  %v486_v41 = vmul.f32 %v485_v30, %v477_v18  ;;  %v509_v43 = vmul.f32 %v1529_v33, %v497_v27  ;;  %s1161_s14 = scalar_lea.hbm %s1160_s18, 24  ;;  %s1165_s12 = scalar_lea.hbm %s1649_s4, 48 }
  0x47   : > { %v479_v34 = vmul.f32 %v478_v24, %v475_v12  ;;  %v494_v44 = vsub.f32 %v493_v35, %v482_v25  ;;  %v499_v45 = vadd.f32 %v498_v36, %v482_v25  ;;  %v514_v46 = vmul.f32 %v1527_v32, %v1529_v33  ;;  %p1162_p4 = scmp.ne.s32.totalorder %s1160_s18, %s1161_s14  ;;  %p1166_p7 = scmp.lt.s32.totalorder %s1160_s18, %s1649_s4 }
  0x48   : > { %v516_v47 = vmul.f32 %v1527_v32, %v1527_v32  ;;  %p1167_p8 = scmp.lt.s32.totalorder %s1165_s12, %s1161_s14 }
  0x49   : > { %p1163_p5 = pnand %p1162_p4, %p1391_p9 }
  0x4a   : > { %p1168_p10 = por %p1167_p8, %p1166_p7 }
  0x4b   : > { %p1164_p6 = pneg %p1163_p5 }
  0x4d   : > { %p1169_p13 = pnand %p1168_p10, %p1164_p6 }
  0x4f   : > { %1172 = shalt.err (!%p1169_p13)
}
  0x50   : > { %s1299_s30 = smov 128   ;;  %s1300_s11 = smov 8   ;;  %603 = vst [vmem:[%s1502_s8] sm:$0xff] %v473_v40  ;;  %v502_v48 = vmul.f32 %v501_v42, %v492_v26  ;;  %v524_v49 = vadd.f32 -1.0, %v910_v39  ;;  %v529_v50 = vadd.f32 %v1541_v38, %v513_v37  ;;  %v532_v51 = vmul.f32 %v1541_v38, %v1541_v38  ;;  %v912_v52 = vld [vmem:[%s1482_s15 + $0x20] sm:$0xff] }
  0x51   : > { %942 = dma.vmem_to_hbm [thread:$0]  (%p1391_p9), %s1511_s1, 384, %s1531_s13, %s606_s16, %s1299_s30, %s1299_s30, %s1300_s11   ;;  %v495_v53 = vmul.f32 %v1508_v14, %v494_v44  ;;  %v510_v54 = vsub.f32 %v509_v43, %v499_v45  ;;  %v515_v55 = vadd.f32 %v514_v46, %v499_v45  ;;  %v517_v56 = vsub.f32 %v1524_v31, %v516_v47 }
  0x52   : > { %s1575_s18 = scalar_lea.sflag [#allocation12], %s364_s0  ;;  %s1187_s1 = sshra.s32 %s1546_s29, 4  ;;  %s1188_s1 = int_to_ptr.hbm [resolvable:$true] %s1187_s1 }
  0x53   : > { %s1189_s8 = scalar_lea.hbm %s1188_s1, 8  ;;  %s1193_s14 = scalar_lea.hbm %s1650_s5, 16 }
  0x54   : > { %p1190_p0 = scmp.ne.s32.totalorder %s1188_s1, %s1189_s8  ;;  %p1194_p3 = scmp.lt.s32.totalorder %s1188_s1, %s1650_s5 }
  0x55   : > { %p1195_p4 = scmp.lt.s32.totalorder %s1193_s14, %s1189_s8 }
  0x56   : > { %p1191_p1 = pnand %p1190_p0, %p1391_p9 }
  0x57   : > { %p1196_p5 = por %p1195_p4, %p1194_p3 }
  0x58   : > { %p1192_p2 = pneg %p1191_p1 }
  0x5a   : > { %p1197_p6 = pnand %p1196_p5, %p1192_p2 }
  0x5c   : > { %1200 = shalt.err (!%p1197_p6)
}
  0x5d   : > { %943 = dma.vmem_to_hbm [thread:$0]  (%p1391_p9), %s1535_s17, 128, %s1546_s29, %s1575_s18   ;;  %v503_v57 = vadd.f32 %v502_v48, %v486_v41  ;;  %v525_v58 = vmul.f32 %v524_v49, %v513_v37  ;;  %v530_v59 = vmul.f32 %v1541_v38, %v524_v49  ;;  %v533_v60 = vsub.f32 %v516_v47, %v532_v51  ;;  %v911_v0 = vld [vmem:[%s1479_s7 + $0x20] sm:$0xff]  ;;  %v914_v2 = vld [vmem:[%s1482_s15 + $0x28] sm:$0xff]  ;;  %v916_v16 = vld [vmem:[%s1482_s15 + $0x30] sm:$0xff] }
  0x5e   : > { %v496_v61 = vadd.f32 %v495_v53, %v479_v34  ;;  %v511_v62 = vmul.f32 %v1527_v32, %v510_v54  ;;  %v518_v63 = vmul.f32 %v517_v56, %v1529_v33  ;;  %v540_v1 = vadd.f32 -1.0, %v912_v52  ;;  %v913_v7 = vld [vmem:[%s1479_s7 + $0x28] sm:$0xff]  ;;  %v915_v21 = vld [vmem:[%s1479_s7 + $0x30] sm:$0xff]  ;;  %v918_v30 = vld [vmem:[%s1482_s15 + $0x38] sm:$0xff]  ;;  %s442_s15 = scalar_lea.vmem [#allocation13], %s899_s19  ;;  %s1221_s28 = scalar_lea.hbm %s1651_s6, 16 }
  0x5f   : > { %v526_v3 = vsub.f32 %v525_v58, %v515_v55  ;;  %v531_v4 = vadd.f32 %v530_v59, %v515_v55  ;;  %v534_v5 = vmul.f32 %v533_v60, %v524_v49  ;;  %v545_v6 = vadd.f32 %v911_v0, %v529_v50  ;;  %v917_v35 = vld [vmem:[%s1479_s7 + $0x38] sm:$0xff]  ;;  %s660_s7 = scalar_lea.hbm %s1651_s6, %s922_s20  ;;  %s662_s17 = sshll.u32 %s442_s15, 4  ;;  %s663_s17 = int_to_ptr.vmem [resolvable:$true] %s662_s17 }
  0x60   : > { %v512_v8 = vadd.f32 %v511_v62, %v496_v61  ;;  %v519_v9 = vadd.f32 %v518_v63, %v503_v57  ;;  %v541_v10 = vmul.f32 %v540_v1, %v529_v50  ;;  %v546_v11 = vmul.f32 %v911_v0, %v540_v1  ;;  %s664_s29 = sshll.u32 %s660_s7, 4  ;;  %s665_s29 = int_to_ptr.hbm [resolvable:$true] %s664_s29 }
  0x61   : > { %v527_v12 = vmul.f32 %v1541_v38, %v526_v3  ;;  %v548_v13 = vmul.f32 %v911_v0, %v911_v0  ;;  %v556_v14 = vadd.f32 -1.0, %v914_v2  ;;  %v561_v15 = vadd.f32 %v913_v7, %v545_v6  ;;  %s1215_s12 = sshra.s32 %s665_s29, 4  ;;  %s1216_s12 = int_to_ptr.hbm [resolvable:$true] %s1215_s12 }
  0x62   : > { %v535_v17 = vadd.f32 %v534_v5, %v519_v9  ;;  %v542_v18 = vsub.f32 %v541_v10, %v531_v4  ;;  %v547_v19 = vadd.f32 %v546_v11, %v531_v4  ;;  %v564_v20 = vmul.f32 %v913_v7, %v913_v7  ;;  %s1217_s24 = scalar_lea.hbm %s1216_s12, 8  ;;  %p1222_p13 = scmp.lt.s32.totalorder %s1216_s12, %s1651_s6 }
  0x63   : > { %v528_v22 = vadd.f32 %v527_v12, %v512_v8  ;;  %v549_v23 = vsub.f32 %v532_v51, %v548_v13  ;;  %v557_v24 = vmul.f32 %v556_v14, %v545_v6  ;;  %v562_v25 = vmul.f32 %v913_v7, %v556_v14  ;;  %p1218_p7 = scmp.ne.s32.totalorder %s1216_s12, %s1217_s24  ;;  %p1223_p0 = scmp.lt.s32.totalorder %s1221_s28, %s1217_s24 }
  0x64   : > { %v543_v26 = vmul.f32 %v911_v0, %v542_v18  ;;  %v565_v27 = vsub.f32 %v548_v13, %v564_v20  ;;  %v572_v28 = vadd.f32 -1.0, %v916_v16  ;;  %v577_v29 = vadd.f32 %v915_v21, %v561_v15 }
  0x65   : > { %v550_v31 = vmul.f32 %v549_v23, %v540_v1  ;;  %v558_v32 = vsub.f32 %v557_v24, %v547_v19  ;;  %v563_v33 = vadd.f32 %v562_v25, %v547_v19  ;;  %v580_v34 = vmul.f32 %v915_v21, %v915_v21  ;;  %p1219_p8 = pnand %p1218_p7, %p1391_p9  ;;  %p1224_p1 = por %p1223_p0, %p1222_p13 }
  0x66   : > { %v544_v36 = vadd.f32 %v543_v26, %v528_v22  ;;  %v566_v37 = vmul.f32 %v565_v27, %v556_v14  ;;  %v573_v38 = vmul.f32 %v572_v28, %v561_v15  ;;  %v578_v39 = vmul.f32 %v915_v21, %v572_v28 }
  0x67   : > { %v551_v40 = vadd.f32 %v550_v31, %v535_v17  ;;  %v559_v41 = vmul.f32 %v913_v7, %v558_v32  ;;  %v581_v42 = vsub.f32 %v564_v20, %v580_v34  ;;  %v588_v43 = vadd.f32 -1.0, %v918_v30  ;;  %p1220_p10 = pneg %p1219_p8 }
  0x68   : > { %v574_v44 = vsub.f32 %v573_v38, %v563_v33  ;;  %v579_v45 = vadd.f32 %v578_v39, %v563_v33  ;;  %v593_v46 = vmul.f32 %v917_v35, %v917_v35 }
  0x69   : > { %v560_v47 = vadd.f32 %v559_v41, %v544_v36  ;;  %v567_v48 = vadd.f32 %v566_v37, %v551_v40  ;;  %v582_v49 = vmul.f32 %v581_v42, %v572_v28  ;;  %v589_v50 = vmul.f32 %v588_v43, %v577_v29  ;;  %p1225_p2 = pnand %p1224_p1, %p1220_p10 }
  0x6a   : > { %v575_v51 = vmul.f32 %v915_v21, %v574_v44  ;;  %v594_v52 = vsub.f32 %v580_v34, %v593_v46  ;;  %v597_v57 = vmul.f32 %v593_v46, %v588_v43 }
  0x6b   : > { %v583_v53 = vadd.f32 %v582_v49, %v567_v48  ;;  %v590_v54 = vsub.f32 %v589_v50, %v579_v45 }
  0x6c   : > { %v576_v55 = vadd.f32 %v575_v51, %v560_v47  ;;  %v595_v56 = vmul.f32 %v594_v52, %v588_v43 }
  0x6d   : > { %v591_v58 = vmul.f32 %v917_v35, %v590_v54 }
  0x6e   : > { %v596_v59 = vadd.f32 %v595_v56, %v583_v53 }
  0x6f   : > { %v592_v60 = vadd.f32 %v591_v58, %v576_v55 }
  0x70   : > { %v598_v61 = vadd.f32 %v597_v57, %v596_v59 }
  0x71   : > { %v599_v62 = vmul.f32 2.0, %v592_v60 }
  0x72   : > { %v601_v63 = vmul.f32 0.33333334, %v598_v61 }
  0x74   : > { %v602_v0 = vadd.f32 %v601_v63, %v599_v62 }
  0x76   : > { %604 = vst [vmem:[%s442_s15] sm:$0xff] %v602_v0 }
  0x77   : > { %1228 = shalt.err (!%p1225_p2)
}
  0x78   : > { %944 = dma.vmem_to_hbm [thread:$0]  (%p1391_p9), %s663_s17, 128, %s665_s29, %s1575_s18  }
  0x79 PF: > { %s1675_s30 = sld [smem:[#allocation19_spill]]  ;;  %p962_p3 = pnand %p887_p12, %p1400_p11 }
  0x7a   : > { %s1677_s1 = sld [smem:[#allocation21_spill]] }
  0x7b   : > { %p963_p4 = pneg %p962_p3 }
  0x7f   : > { %s676_s8 = sand.u32 1, %s1675_s30  }
  0x80   : > { %s677_s13 = scalar_lea.sflag [#allocation4], %s676_s8 }
  0x81   : > { %1266 = dma.done.wait (%p963_p4), %s677_s13, 384  }
  0x82   : > { %1268 = vsyncadd (%p963_p4), %s677_s13, 4294966912  ;;  %s1678_s16 = sadd.s32 4294967294, %s1677_s1  }
  0x83   : > { %s686_s14 = sand.u32 1, %s1678_s16  }
  0x84   : > { %s687_s9 = scalar_lea.sflag [#allocation12], %s686_s14 }
  0x85   : > { %1270 = dma.done.wait (%p963_p4), %s687_s9, 256  }
  0x86   : > { %1272 = vsyncadd (%p963_p4), %s687_s9, 4294967040  ;;  %s32_s26 = sadd.s32 1, %s1677_s1   ;;  %s1679_s10 = sld [smem:[#allocation20_spill]] }
  0x87   : > { %p29_p9 = scmp.ge.s32.totalorder %s32_s26, 4   ;;  %s1680_s23 = sld [smem:[#allocation23_spill]] }
  0x88   : > { %s1681_s18 = sld [smem:[#allocation22_spill]]  ;;  %s1682_s21 = smov %s1279_s22 }
  0x89   : > { %s1684_s24 = smov %s1291_s25 }
  0x8a   :  { %31 = sbr.rel (!%p29_p9) target bundleno = 15 (0xf), region = 168 }
  0x8c   : > { %s1683_s22 = smov %s1679_s10 }
  0x8e   : > { %s1685_s25 = smov %s1681_s18 }
  0x8f   :  { %703 = vsyncpa [#allocation3], 1 }
  0x90   :  { %705 = vsyncpa [#allocation3 + $0x1], 1 }
  0x91   :  { %706 = vsyncpa [#allocation6], 1 }
  0x92   :  { %708 = vsyncpa [#allocation6 + $0x1], 1 }
  0x93   :  { %709 = vsyncpa [#allocation9], 1 }
  0x94   :  { %711 = vsyncpa [#allocation9 + $0x1], 1 }
  0x95   :  { %712 = vsyncpa [#allocation4], 1 }
  0x96   :  { %714 = vsyncpa [#allocation4 + $0x1], 1 }
  0x97   :  { %715 = vsyncpa [#allocation12], 1 }
  0x98   :  { %717 = vsyncpa [#allocation12 + $0x1], 1 }

</bundles_post_ra>
